<compile_context>
chip_gen: v7x
topology: tpu7x:2x2x1
jax: 0.10.0
libtpu: 0.0.40
codegen_flags: <defaults>
</compile_context>

<pallas_src>
import functools

import jax
import jax.numpy as jnp
from jax.experimental import pallas as pl
from jax.experimental.pallas import tpu as pltpu


def _round_up(v, m):
    return (v + m - 1) // m * m


# ---------------------------------------------------------------------------
# Kernel bodies
# ---------------------------------------------------------------------------
def _tip_kernel_clip(x_ref, keys_ref, vals_ref, clipw_ref, out_ref, acc_ref, *,
                     beta, alpha, logits_scale):
    n = pl.program_id(1)

    @pl.when(n == 0)
    def _init():
        acc_ref[...] = jnp.zeros_like(acc_ref)

    # affinity = x @ cache_keys  (bf16 operands, f32 accumulation on the MXU)
    affinity = jnp.dot(x_ref[...], keys_ref[...],
                       preferred_element_type=jnp.float32)            # [tb, tn]
    # exp(-(beta - beta*affinity)) == exp(beta*(affinity - 1)); exp stays in f32 (EUP),
    # downcast only for the second MXU dot.
    act = jnp.exp(beta * (affinity - 1.0)).astype(vals_ref.dtype)
    acc_ref[...] += jnp.dot(act, vals_ref[...],
                            preferred_element_type=jnp.float32)

    @pl.when(n == pl.num_programs(1) - 1)
    def _finalize():
        # clip logits + scaling are applied exactly once per batch tile.
        clip = jnp.dot(x_ref[...], clipw_ref[...],
                       preferred_element_type=jnp.float32)
        out_ref[...] = (logits_scale * clip
                        + alpha * acc_ref[...]).astype(out_ref.dtype)


def _tip_kernel_noclip(x_ref, keys_ref, vals_ref, out_ref, acc_ref, *, beta, alpha):
    n = pl.program_id(1)

    @pl.when(n == 0)
    def _init():
        acc_ref[...] = jnp.zeros_like(acc_ref)

    affinity = jnp.dot(x_ref[...], keys_ref[...],
                       preferred_element_type=jnp.float32)            # [tb, tn]
    act = jnp.exp(beta * (affinity - 1.0)).astype(vals_ref.dtype)
    acc_ref[...] += jnp.dot(act, vals_ref[...],
                            preferred_element_type=jnp.float32)

    @pl.when(n == pl.num_programs(1) - 1)
    def _finalize():
        out_ref[...] = (alpha * acc_ref[...]).astype(out_ref.dtype)


# ---------------------------------------------------------------------------
# Wrapper
# ---------------------------------------------------------------------------
def tip_adapter_forward(x, cache_keys, cache_values, clip_weights=None,
                        *, beta=1.0, alpha=1.0, logits_scale=60.0):
    """Fused Tip-Adapter forward, tiled over (batch, cache) with a VMEM accumulator."""
    B, D = x.shape
    Dk, N = cache_keys.shape
    Nv, C = cache_values.shape
    assert D == Dk and N == Nv
    if clip_weights is not None:
        assert clip_weights.shape == (D, C)

    # ---- padding / tiling ------------------------------------------------
    D_pad = _round_up(D, 128)            # lane dim of x tile / sublane dim of keys tile
    C_pad = _round_up(C, 128)            # lane-dense output: avoids masked vst.msk stores
    if B <= 256:
        tb = _round_up(B, 16)            # bf16 sublane packing
        B_pad = tb
    else:
        tb = 256
        B_pad = _round_up(B, tb)

    # N (cache/reduction) tile: sized so the double-buffered keys+vals tiles fit a
    # conservative VMEM budget (works on v5e/v6e/v7x with the explicit 64 MiB limit).
    vmem_budget = 24 * 1024 * 1024
    bytes_per_tn = 2 * (D_pad + C_pad) * 2           # dbl-buffered bf16 keys col + vals row
    tn_cap = max(128, (vmem_budget // bytes_per_tn) // 128 * 128)
    tn = min(2048, tn_cap, _round_up(N, 128))
    N_pad = _round_up(N, tn)

    # ---- cast static weights / features to bf16 (f32 accumulation in-kernel) ----
    wdt = jnp.bfloat16
    x_p = jnp.pad(x, ((0, B_pad - B), (0, D_pad - D))).astype(wdt)
    keys_p = jnp.pad(cache_keys, ((0, D_pad - D), (0, N_pad - N))).astype(wdt)
    # padded cache rows have all-zero one-hot values, so even though exp(beta*(0-1)) != 0
    # for the padded affinity columns, their contribution to cache_logits is exactly zero.
    vals_p = jnp.pad(cache_values, ((0, N_pad - N), (0, C_pad - C))).astype(wdt)

    grid = (B_pad // tb, N_pad // tn)

    x_spec = pl.BlockSpec((tb, D_pad), lambda b, n: (b, 0))     # resident across N axis
    keys_spec = pl.BlockSpec((D_pad, tn), lambda b, n: (0, n))
    vals_spec = pl.BlockSpec((tn, C_pad), lambda b, n: (n, 0))
    out_spec = pl.BlockSpec((tb, C_pad), lambda b, n: (b, 0))

    # advisory cost estimate for XLA's scheduler
    flops = 2 * B_pad * D_pad * N_pad + 2 * B_pad * N_pad * C_pad
    bytes_accessed = (x_p.size + grid[0] * (keys_p.size + vals_p.size)) * 2 \
                     + B_pad * C_pad * 4

    if clip_weights is not None:
        clipw_p = jnp.pad(clip_weights,
                          ((0, D_pad - D), (0, C_pad - C))).astype(wdt)
        flops += 2 * B_pad * D_pad * C_pad
        bytes_accessed += grid[0] * clipw_p.size * 2
        kernel = functools.partial(_tip_kernel_clip, beta=float(beta),
                                   alpha=float(alpha), logits_scale=float(logits_scale))
        in_specs = [x_spec, keys_spec, vals_spec,
                    pl.BlockSpec((D_pad, C_pad), lambda b, n: (0, 0))]
        args = (x_p, keys_p, vals_p, clipw_p)
    else:
        kernel = functools.partial(_tip_kernel_noclip, beta=float(beta),
                                   alpha=float(alpha))
        in_specs = [x_spec, keys_spec, vals_spec]
        args = (x_p, keys_p, vals_p)

    out = pl.pallas_call(
        kernel,
        out_shape=jax.ShapeDtypeStruct((B_pad, C_pad), jnp.float32),
        grid=grid,
        in_specs=in_specs,
        out_specs=out_spec,
        scratch_shapes=[pltpu.VMEM((tb, C_pad), jnp.float32)],
        compiler_params=pltpu.CompilerParams(
            dimension_semantics=("parallel", "arbitrary"),
            vmem_limit_bytes=64 * 1024 * 1024),
        cost_estimate=pl.CostEstimate(
            flops=int(flops),
            transcendentals=int(B_pad * N_pad),
            bytes_accessed=int(bytes_accessed)),
    )(*args)

    return out[:B, :C]


# ---------------------------------------------------------------------------
# References
# ---------------------------------------------------------------------------
def _reference_f32(x, cache_keys, cache_values, clip_weights, beta, alpha, logits_scale):
    affinity = x @ cache_keys
    cache_logits = jnp.exp(-1.0 * (beta - beta * affinity)) @ cache_values
    if clip_weights is not None:
        clip_logits = logits_scale * (x @ clip_weights)
        return clip_logits + cache_logits * alpha
    return cache_logits * alpha


def _reference_bf16(x, cache_keys, cache_values, clip_weights, beta, alpha, logits_scale):
    """Same math as the kernel (bf16 operands, f32 accumulation) for a tight check."""
    xb = x.astype(jnp.bfloat16)
    kb = cache_keys.astype(jnp.bfloat16)
    vb = cache_values.astype(jnp.bfloat16)
    affinity = jnp.dot(xb, kb, preferred_element_type=jnp.float32)
    act = jnp.exp(beta * (affinity - 1.0)).astype(jnp.bfloat16)
    cache_logits = jnp.dot(act, vb, preferred_element_type=jnp.float32)
    if clip_weights is not None:
        cb = clip_weights.astype(jnp.bfloat16)
        clip_logits = logits_scale * jnp.dot(xb, cb, preferred_element_type=jnp.float32)
        return clip_logits + alpha * cache_logits
    return alpha * cache_logits


if __name__ == "__main__":
    key = jax.random.PRNGKey(0)
    B, D, N_CACHE, N_CLASSES = 8, 32, 64, 16
    beta, alpha, logits_scale = 5.5, 1.0, 60.0

    k0, k1, k2, k3 = jax.random.split(key, 4)

    # Deterministic synthetic "cache model" (stands in for build_cache_model output).
    x = jax.random.normal(k0, (B, D), dtype=jnp.float32)
    x = x / jnp.linalg.norm(x, axis=-1, keepdims=True)          # CLIP features are L2-normed

    cache_keys = jax.random.normal(k1, (D, N_CACHE), dtype=jnp.float32)
    cache_keys = cache_keys / jnp.linalg.norm(cache_keys, axis=0, keepdims=True)

    labels = jax.random.randint(k2, (N_CACHE,), 0, N_CLASSES)
    cache_values = jax.nn.one_hot(labels, N_CLASSES, dtype=jnp.float32)

    clip_weights = jax.random.normal(k3, (D, N_CLASSES), dtype=jnp.float32)
    clip_weights = clip_weights / jnp.linalg.norm(clip_weights, axis=0, keepdims=True)

    # Path 1: if_clip_score=True
    out_clip = tip_adapter_forward(x, cache_keys, cache_values, clip_weights,
                                   beta=beta, alpha=alpha, logits_scale=logits_scale)
    out_clip = jax.block_until_ready(out_clip)
    ref_b = _reference_bf16(x, cache_keys, cache_values, clip_weights, beta, alpha, logits_scale)
    ref_f = _reference_f32(x, cache_keys, cache_values, clip_weights, beta, alpha, logits_scale)
    assert jnp.allclose(out_clip, ref_b, atol=1e-2, rtol=1e-2), "clip path: precision-matched mismatch"
    assert jnp.allclose(out_clip, ref_f, atol=1.0, rtol=5e-2), "clip path: semantics mismatch vs f32 ref"

    # Path 2: if_clip_score=False (default in the module)
    out_noclip = tip_adapter_forward(x, cache_keys, cache_values, None,
                                     beta=beta, alpha=alpha)
    out_noclip = jax.block_until_ready(out_noclip)
    ref_b2 = _reference_bf16(x, cache_keys, cache_values, None, beta, alpha, logits_scale)
    ref_f2 = _reference_f32(x, cache_keys, cache_values, None, beta, alpha, logits_scale)
    assert jnp.allclose(out_noclip, ref_b2, atol=1e-2, rtol=1e-2), "no-clip path: precision-matched mismatch"
    assert jnp.allclose(out_noclip, ref_f2, atol=1.0, rtol=5e-2), "no-clip path: semantics mismatch vs f32 ref"

    print("KERNEL_OK")
</pallas_src>

<mosaic_0001>
module attributes {stable_mosaic.version = 11 : i64} {
  func.func @_tip_kernel_clip(%arg0: i32, %arg1: i32, %arg2: memref<16x128xbf16, #tpu.memory_space<vmem>>, %arg3: memref<128x128xbf16, #tpu.memory_space<vmem>>, %arg4: memref<128x128xbf16, #tpu.memory_space<vmem>>, %arg5: memref<128x128xbf16, #tpu.memory_space<vmem>>, %arg6: memref<16x128xf32, #tpu.memory_space<vmem>>, %arg7: memref<16x128xf32, #tpu.memory_space<vmem>>) attributes {dimension_semantics = [#tpu.dimension_semantics<parallel>, #tpu.dimension_semantics<arbitrary>], iteration_bounds = array<i64: 1, 1>, scalar_prefetch = 0 : i64, scratch_operands = 1 : i64, tpu.core_type = #tpu.core_type<tc>, window_params = [{transform_indices = @transform_0, window_bounds = array<i64: 16, 128>}, {transform_indices = @transform_1, window_bounds = array<i64: 128, 128>}, {transform_indices = @transform_2, window_bounds = array<i64: 128, 128>}, {pipeline_mode = #tpu.pipeline_mode<synchronous>, transform_indices = @transform_3, window_bounds = array<i64: 128, 128>}, {transform_indices = @transform_4, window_bounds = array<i64: 16, 128>}]} {
    %c0_i32 = arith.constant 0 : i32
    %0 = arith.cmpi eq, %arg1, %c0_i32 : i32
    %1 = arith.extui %0 : i1 to i32
    %c0_i32_0 = arith.constant 0 : i32
    %2 = arith.cmpi ne, %1, %c0_i32_0 : i32
    scf.if %2 {
      %cst_15 = arith.constant 0.000000e+00 : f32
      %20 = vector.broadcast %cst_15 : f32 to vector<16x128xf32>
      %c0_16 = arith.constant 0 : index
      %c0_17 = arith.constant 0 : index
      %21 = vector.load %arg7[%c0_16, %c0_17] : memref<16x128xf32, #tpu.memory_space<vmem>>, vector<16x128xf32>
      tpu.vector_store %arg7[%c0_16, %c0_17], %20 {strides = array<i32>} : memref<16x128xf32, #tpu.memory_space<vmem>>, vector<16x128xf32>,
    } else {
    }
    %c0 = arith.constant 0 : index
    %c0_1 = arith.constant 0 : index
    %3 = vector.load %arg2[%c0, %c0_1] : memref<16x128xbf16, #tpu.memory_space<vmem>>, vector<16x128xbf16>
    %c0_2 = arith.constant 0 : index
    %c0_3 = arith.constant 0 : index
    %4 = vector.load %arg3[%c0_2, %c0_3] : memref<128x128xbf16, #tpu.memory_space<vmem>>, vector<128x128xbf16>
    %cst = arith.constant dense<0.000000e+00> : vector<16x128xf32>
    %5 = tpu.matmul %3, %4, %cst {dimension_numbers = #tpu.dot_dimension_numbers<[1], [0], [0], [1], [0, 0, 1, 1], [], []>} : vector<16x128xbf16>, vector<128x128xbf16>, vector<16x128xf32> -> vector<16x128xf32>
    %cst_4 = arith.constant 1.000000e+00 : f32
    %6 = vector.broadcast %cst_4 : f32 to vector<16x128xf32>
    %7 = arith.subf %5, %6 : vector<16x128xf32>
    %cst_5 = arith.constant 5.500000e+00 : f32
    %8 = vector.broadcast %cst_5 : f32 to vector<16x128xf32>
    %9 = arith.mulf %8, %7 : vector<16x128xf32>
    %10 = math.exp %9 : vector<16x128xf32>
    %11 = arith.truncf %10 : vector<16x128xf32> to vector<16x128xbf16>
    %c0_6 = arith.constant 0 : index
    %c0_7 = arith.constant 0 : index
    %12 = vector.load %arg7[%c0_6, %c0_7] : memref<16x128xf32, #tpu.memory_space<vmem>>, vector<16x128xf32>
    %c0_8 = arith.constant 0 : index
    %c0_9 = arith.constant 0 : index
    %13 = vector.load %arg4[%c0_8, %c0_9] : memref<128x128xbf16, #tpu.memory_space<vmem>>, vector<128x128xbf16>
    %cst_10 = arith.constant dense<0.000000e+00> : vector<16x128xf32>
    %14 = tpu.matmul %11, %13, %cst_10 {dimension_numbers = #tpu.dot_dimension_numbers<[1], [0], [0], [1], [0, 0, 1, 1], [], []>} : vector<16x128xbf16>, vector<128x128xbf16>, vector<16x128xf32> -> vector<16x128xf32>
    %15 = arith.addf %12, %14 : vector<16x128xf32>
    %c0_11 = arith.constant 0 : index
    %c0_12 = arith.constant 0 : index
    %16 = vector.load %arg7[%c0_11, %c0_12] : memref<16x128xf32, #tpu.memory_space<vmem>>, vector<16x128xf32>
    tpu.vector_store %arg7[%c0_11, %c0_12], %15 {strides = array<i32>} : memref<16x128xf32, #tpu.memory_space<vmem>>, vector<16x128xf32>,
    %c0_i32_13 = arith.constant 0 : i32
    %17 = arith.cmpi eq, %arg1, %c0_i32_13 : i32
    %18 = arith.extui %17 : i1 to i32
    %c0_i32_14 = arith.constant 0 : i32
    %19 = arith.cmpi ne, %18, %c0_i32_14 : i32
    scf.if %19 {
      %c0_15 = arith.constant 0 : index
      %c0_16 = arith.constant 0 : index
      %20 = vector.load %arg2[%c0_15, %c0_16] : memref<16x128xbf16, #tpu.memory_space<vmem>>, vector<16x128xbf16>
      %c0_17 = arith.constant 0 : index
      %c0_18 = arith.constant 0 : index
      %21 = vector.load %arg5[%c0_17, %c0_18] : memref<128x128xbf16, #tpu.memory_space<vmem>>, vector<128x128xbf16>
      %cst_19 = arith.constant dense<0.000000e+00> : vector<16x128xf32>
      %22 = tpu.matmul %20, %21, %cst_19 {dimension_numbers = #tpu.dot_dimension_numbers<[1], [0], [0], [1], [0, 0, 1, 1], [], []>} : vector<16x128xbf16>, vector<128x128xbf16>, vector<16x128xf32> -> vector<16x128xf32>
      %cst_20 = arith.constant 6.000000e+01 : f32
      %23 = vector.broadcast %cst_20 : f32 to vector<16x128xf32>
      %24 = arith.mulf %23, %22 : vector<16x128xf32>
      %c0_21 = arith.constant 0 : index
      %c0_22 = arith.constant 0 : index
      %25 = vector.load %arg7[%c0_21, %c0_22] : memref<16x128xf32, #tpu.memory_space<vmem>>, vector<16x128xf32>
      %cst_23 = arith.constant 1.000000e+00 : f32
      %26 = vector.broadcast %cst_23 : f32 to vector<16x128xf32>
      %27 = arith.mulf %26, %25 : vector<16x128xf32>
      %28 = arith.addf %24, %27 : vector<16x128xf32>
      %c0_24 = arith.constant 0 : index
      %c0_25 = arith.constant 0 : index
      %29 = vector.load %arg6[%c0_24, %c0_25] : memref<16x128xf32, #tpu.memory_space<vmem>>, vector<16x128xf32>
      tpu.vector_store %arg6[%c0_24, %c0_25], %28 {strides = array<i32>} : memref<16x128xf32, #tpu.memory_space<vmem>>, vector<16x128xf32>,
    } else {
    }
    return
  }
  func.func @transform_0(%arg0: i32, %arg1: i32) -> (i32, i32) {
    %c0_i32 = arith.constant 0 : i32
    %c0_i32_0 = arith.constant 0 : i32
    return %arg0, %c0_i32 : i32, i32
  }
  func.func @transform_1(%arg0: i32, %arg1: i32) -> (i32, i32) {
    %c0_i32 = arith.constant 0 : i32
    %c0_i32_0 = arith.constant 0 : i32
    return %c0_i32, %arg1 : i32, i32
  }
  func.func @transform_2(%arg0: i32, %arg1: i32) -> (i32, i32) {
    %c0_i32 = arith.constant 0 : i32
    %c0_i32_0 = arith.constant 0 : i32
    return %arg1, %c0_i32 : i32, i32
  }
  func.func @transform_3(%arg0: i32, %arg1: i32) -> (i32, i32) {
    %c0_i32 = arith.constant 0 : i32
    %c0_i32_0 = arith.constant 0 : i32
    %c0_i32_1 = arith.constant 0 : i32
    return %c0_i32, %c0_i32_0 : i32, i32
  }
  func.func @transform_4(%arg0: i32, %arg1: i32) -> (i32, i32) {
    %c0_i32 = arith.constant 0 : i32
    %c0_i32_0 = arith.constant 0 : i32
    return %arg0, %c0_i32 : i32, i32
  }
}

</mosaic_0001>

<bundles_post_ra>
// kernel: tpu_custom_call.1
= control target key start
LH: loop header
LB: loop body
LE: loop exit
PB: predicated region body
PF: predicated region fallthrough
CT: control target
= control target key end

     0   :  { %9 = vsyncpa [#allocation4], 0  ;;  %s882_s0 = inlined_call_operand.hbm [shape: bf16[16,128], index: 0, kind: input, shape index: {}]   ;;  %s883_s1 = inlined_call_operand.hbm [shape: bf16[128,128], index: 1, kind: input, shape index: {}]   ;;  %s884_s2 = inlined_call_operand.hbm [shape: bf16[128,128], index: 2, kind: input, shape index: {}]   ;;  %s885_s3 = inlined_call_operand.hbm [shape: bf16[128,128], index: 3, kind: input, shape index: {}]   ;;  %s886_s4 = inlined_call_operand.hbm [shape: f32[16,128], index: 4, kind: output, shape index: {}]  }
   0x1   :  { %10 = vsyncpa [#allocation7], 0 }
   0x2   :  { %11 = vsyncpa [#allocation10], 0 }
   0x3   :  { %12 = vsyncpa [#allocation5], 0  ;;  %s730_s15 = smov [#allocation6]   ;;  %s731_s17 = smov [#allocation3]  }
   0x4   :  { %s30_s16 = sshll.u32 %s730_s15, 4  ;;  %s18_s18 = sshll.u32 %s731_s17, 4  ;;  %s31_s16 = int_to_ptr.vmem [resolvable:$true] %s30_s16  ;;  %s766_s18 = int_to_ptr.vmem [resolvable:$true] %s18_s18 }
   0x5   :  { %s612_s21 = scalar_lea.hbm %s883_s1, 1024 }
   0x6   :  { %p613_p0 = scmp.ne.s32.totalorder %s883_s1, %s612_s21  ;;  %p616_p1 = scmp.lt.u32.totalorder %s612_s21, %s883_s1 }
   0x8   :  { %p618_p2 = pnand %p616_p1, %p613_p0 }
   0xa   :  { %621 = shalt.err (!%p618_p2)
}
   0xb   :  { %s622_s26 = scalar_lea.vmem %s31_s16, 1024  ;;  %p627_p4 = scmp.lt.s32.totalorder %s31_s16, %s31_s16 }
   0xc   :  { %p623_p3 = scmp.ne.s32.totalorder %s31_s16, %s622_s26  ;;  %p628_p5 = scmp.lt.s32.totalorder %s622_s26, %s622_s26 }
   0xe   :  { %p629_p6 = por %p628_p5, %p627_p4 }
  0x10   :  { %p630_p7 = pnand %p629_p6, %p623_p3 }
  0x12   :  { %633 = shalt.err (!%p630_p7)
}
  0x13   :  { %s732_s27 = smov 64   ;;  %s733_s28 = smov 4  }
  0x14   :  { %36 = dma.hbm_to_vmem [thread:$0]  %s883_s1, 1024, %s31_s16, [#allocation7], %s732_s27, %s732_s27, %s733_s28  }
  0x15   :  { %s634_s7 = scalar_lea.hbm %s882_s0, 128 }
  0x16   :  { %p635_p8 = scmp.ne.s32.totalorder %s882_s0, %s634_s7  ;;  %p638_p9 = scmp.lt.u32.totalorder %s634_s7, %s882_s0 }
  0x18   :  { %p640_p10 = pnand %p638_p9, %p635_p8 }
  0x1a   :  { %643 = shalt.err (!%p640_p10)
}
  0x1b   :  { %s644_s12 = scalar_lea.vmem %s766_s18, 128  ;;  %p649_p12 = scmp.lt.s32.totalorder %s766_s18, %s766_s18 }
  0x1c   :  { %p645_p11 = scmp.ne.s32.totalorder %s766_s18, %s644_s12  ;;  %p650_p13 = scmp.lt.s32.totalorder %s644_s12, %s644_s12 }
  0x1e   :  { %p651_p0 = por %p650_p13, %p649_p12 }
  0x20   :  { %p652_p1 = pnand %p651_p0, %p645_p11 }
  0x22   :  { %655 = shalt.err (!%p652_p1)
}
  0x23   :  { %24 = dma.hbm_to_vmem [thread:$0]  %s882_s0, 128, %s766_s18, [#allocation4], %s732_s27, %s732_s27, %s733_s28  }
  0x24   :  { %s734_s14 = smov [#allocation8]   ;;  %s735_s16 = smov [#allocation9]  }
  0x25   :  { %s42_s15 = sshll.u32 %s734_s14, 4  ;;  %s54_s17 = sshll.u32 %s735_s16, 4  ;;  %s43_s15 = int_to_ptr.vmem [resolvable:$true] %s42_s15  ;;  %s803_s17 = int_to_ptr.vmem [resolvable:$true] %s54_s17 }
  0x26   :  { %s656_s21 = scalar_lea.hbm %s884_s2, 1024 }
  0x27   :  { %p657_p2 = scmp.ne.s32.totalorder %s884_s2, %s656_s21  ;;  %p660_p3 = scmp.lt.u32.totalorder %s656_s21, %s884_s2 }
  0x29   :  { %p662_p4 = pnand %p660_p3, %p657_p2 }
  0x2b   :  { %665 = shalt.err (!%p662_p4)
}
  0x2c   :  { %s666_s0 = scalar_lea.vmem %s43_s15, 1024  ;;  %p671_p6 = scmp.lt.s32.totalorder %s43_s15, %s43_s15 }
  0x2d   :  { %p667_p5 = scmp.ne.s32.totalorder %s43_s15, %s666_s0  ;;  %p672_p7 = scmp.lt.s32.totalorder %s666_s0, %s666_s0 }
  0x2f   :  { %p673_p8 = por %p672_p7, %p671_p6 }
  0x31   :  { %p674_p9 = pnand %p673_p8, %p667_p5 }
  0x33   :  { %677 = shalt.err (!%p674_p9)
}
  0x34   :  { %48 = dma.hbm_to_vmem [thread:$0]  %s884_s2, 1024, %s43_s15, [#allocation7], %s732_s27, %s732_s27, %s733_s28  }
  0x35   :  { %s678_s5 = scalar_lea.hbm %s885_s3, 1024 }
  0x36   :  { %p679_p10 = scmp.ne.s32.totalorder %s885_s3, %s678_s5  ;;  %p682_p11 = scmp.lt.u32.totalorder %s678_s5, %s885_s3 }
  0x38   :  { %p684_p12 = pnand %p682_p11, %p679_p10 }
  0x3a   :  { %687 = shalt.err (!%p684_p12)
}
  0x3b   :  { %s688_s10 = scalar_lea.vmem %s803_s17, 1024  ;;  %p693_p0 = scmp.lt.s32.totalorder %s803_s17, %s803_s17 }
  0x3c   :  { %p689_p13 = scmp.ne.s32.totalorder %s803_s17, %s688_s10  ;;  %p694_p1 = scmp.lt.s32.totalorder %s688_s10, %s688_s10 }
  0x3e   :  { %p695_p2 = por %p694_p1, %p693_p0 }
  0x40   :  { %p696_p3 = pnand %p695_p2, %p689_p13 }
  0x42   :  { %699 = shalt.err (!%p696_p3)
}
  0x43   :  { %60 = dma.hbm_to_vmem [thread:$0]  %s885_s3, 1024, %s803_s17, [#allocation10], %s732_s27, %s732_s27, %s733_s28  }
  0x44   :  { %722 = dma.done.wait [#allocation4], 128  }
  0x45   :  { %723 = vsyncadd [#allocation4], 4294967168 }
  0x46   :  { %724 = dma.done.wait [#allocation7], 2048  }
  0x47   :  { %725 = vsyncadd [#allocation7], 4294965248 }
  0x48   :  { %726 = dma.done.wait [#allocation10], 1024  }
  0x49   :  { %727 = vsyncadd [#allocation10], 4294966272  ;;  %v736_v0 = vmov 0.0   ;;  %vm737_vm0 = vmmov 0   ;;  %v582_v1 = vld [vmem:[#allocation6] sm:$0xff]   ;;  %v583_v2 = vld [vmem:[#allocation6 + $0x8] sm:$0xff]  }
  0x4a   :  { %511 = vmatprep.subr.bf16.mxu0 %v736_v0  ;;  %527 = vmatprep.mubr.msk.bf16.mxu0 %vm737_vm0, %v736_v0  ;;  %v584_v3 = vld [vmem:[#allocation6 + $0x10] sm:$0xff]   ;;  %v585_v4 = vld [vmem:[#allocation6 + $0x18] sm:$0xff]   ;;  %v593_v5 = vld [vmem:[#allocation8] sm:$0xff]   ;;  %s738_s3 = smov [#allocation11]  }
  0x4b   :  { %531 = vmatprep.subr.bf16.mxu1 %v736_v0  ;;  %547 = vmatprep.mubr.msk.bf16.mxu1 %vm737_vm0, %v736_v0  ;;  %v595_v6 = vld [vmem:[#allocation8 + $0x8] sm:$0xff]   ;;  %v586_v7 = vld [vmem:[#allocation6 + $0x20] sm:$0xff]   ;;  %v597_v8 = vld [vmem:[#allocation8 + $0x10] sm:$0xff]   ;;  %s442_s27 = sshll.u32 %s738_s3, 4  ;;  %s443_s27 = int_to_ptr.vmem [resolvable:$true] %s442_s27 }
  0x4c   :  { %512 = vmatpush3.bf16.msra.mxu0 %v582_v1  ;;  %532 = vmatpush3.bf16.msra.mxu1 %v593_v5  ;;  %v587_v9 = vld [vmem:[#allocation6 + $0x28] sm:$0xff]   ;;  %v588_v10 = vld [vmem:[#allocation6 + $0x30] sm:$0xff]   ;;  %v589_v11 = vld [vmem:[#allocation6 + $0x38] sm:$0xff]   ;;  %s700_s28 = scalar_lea.vmem %s443_s27, 256  ;;  %p705_p5 = scmp.lt.s32.totalorder %s443_s27, %s443_s27 }
  0x4d   :  { %513 = vmatprep.subr.bf16.mxu0 %v736_v0  ;;  %533 = vmatprep.subr.bf16.mxu1 %v736_v0  ;;  %v590_v12 = vld [vmem:[#allocation3] sm:$0xff]   ;;  %v591_v13 = vld [vmem:[#allocation9] sm:$0xff]   ;;  %v592_v14 = vld [vmem:[#allocation9 + $0x8] sm:$0xff]   ;;  %p701_p4 = scmp.ne.s32.totalorder %s443_s27, %s700_s28  ;;  %p706_p6 = scmp.lt.s32.totalorder %s700_s28, %s700_s28 }
  0x4e   :  { %v594_v15 = vld [vmem:[#allocation9 + $0x10] sm:$0xff]   ;;  %v596_v16 = vld [vmem:[#allocation9 + $0x18] sm:$0xff]   ;;  %v598_v17 = vld [vmem:[#allocation9 + $0x20] sm:$0xff]  }
  0x4f   :  { %v599_v18 = vld [vmem:[#allocation8 + $0x18] sm:$0xff]   ;;  %v600_v19 = vld [vmem:[#allocation9 + $0x28] sm:$0xff]   ;;  %v601_v20 = vld [vmem:[#allocation8 + $0x20] sm:$0xff]   ;;  %p707_p7 = por %p706_p6, %p705_p5 }
  0x50   :  { %514 = vmatpush3.bf16.msra.mxu0 %v583_v2  ;;  %534 = vmatpush3.bf16.msra.mxu1 %v595_v6  ;;  %v602_v21 = vld [vmem:[#allocation9 + $0x30] sm:$0xff]   ;;  %v603_v22 = vld [vmem:[#allocation8 + $0x28] sm:$0xff]   ;;  %v604_v23 = vld [vmem:[#allocation9 + $0x38] sm:$0xff]  }
  0x51   :  { %515 = vmatprep.subr.bf16.mxu0 %v736_v0  ;;  %535 = vmatprep.subr.bf16.mxu1 %v736_v0  ;;  %v605_v24 = vld [vmem:[#allocation8 + $0x30] sm:$0xff]   ;;  %v606_v25 = vld [vmem:[#allocation3] sm:$0xff]   ;;  %p708_p8 = pnand %p707_p7, %p701_p4 }
  0x52   :  { %v607_v26 = vld [vmem:[#allocation8 + $0x38] sm:$0xff]  }
  0x54   :  { %516 = vmatpush3.bf16.msra.mxu0 %v584_v3  ;;  %536 = vmatpush3.bf16.msra.mxu1 %v597_v8 }
  0x55   :  { %517 = vmatprep.subr.bf16.mxu0 %v736_v0  ;;  %537 = vmatprep.subr.bf16.mxu1 %v736_v0 }
  0x58   :  { %518 = vmatpush3.bf16.msra.mxu0 %v585_v4  ;;  %538 = vmatpush3.bf16.msra.mxu1 %v599_v18 }
  0x59   :  { %519 = vmatprep.subr.bf16.mxu0 %v736_v0  ;;  %539 = vmatprep.subr.bf16.mxu1 %v736_v0 }
  0x5c   :  { %520 = vmatpush3.bf16.msra.mxu0 %v586_v7  ;;  %540 = vmatpush3.bf16.msra.mxu1 %v601_v20 }
  0x5d   :  { %521 = vmatprep.subr.bf16.mxu0 %v736_v0  ;;  %541 = vmatprep.subr.bf16.mxu1 %v736_v0 }
  0x60   :  { %522 = vmatpush3.bf16.msra.mxu0 %v587_v9  ;;  %542 = vmatpush3.bf16.msra.mxu1 %v603_v22 }
  0x61   :  { %523 = vmatprep.subr.bf16.mxu0 %v736_v0  ;;  %543 = vmatprep.subr.bf16.mxu1 %v736_v0 }
  0x64   :  { %524 = vmatpush3.bf16.msra.mxu0 %v588_v10  ;;  %544 = vmatpush3.bf16.msra.mxu1 %v605_v24 }
  0x65   :  { %525 = vmatprep.subr.bf16.mxu0 %v736_v0  ;;  %545 = vmatprep.subr.bf16.mxu1 %v736_v0 }
  0x68   :  { %526 = vmatpush3.bf16.msra.mxu0 %v589_v11  ;;  %546 = vmatpush3.bf16.msra.mxu1 %v607_v26 }
  0x69   :  { %551 = vmatprep.subr.bf16.mxu0 %v736_v0 }
  0x6b   :  { %528 = vmatmul.mubr.bf16.vlgmr.msra.gmra.mrb[0].mxu0 %v590_v12 }
  0x6c   :  { %552 = vmatpush3.bf16.msra.mxu0 %v591_v13  ;;  %567 = vmatprep.mubr.msk.bf16.mxu0 %vm737_vm0, %v736_v0 }
  0x6d   :  { %553 = vmatprep.subr.bf16.mxu0 %v736_v0 }
  0x70   :  { %554 = vmatpush3.bf16.msra.mxu0 %v592_v14 }
  0x71   :  { %555 = vmatprep.subr.bf16.mxu0 %v736_v0 }
  0x74   :  { %556 = vmatpush3.bf16.msra.mxu0 %v594_v15 }
  0x75   :  { %557 = vmatprep.subr.bf16.mxu0 %v736_v0 }
  0x78   :  { %558 = vmatpush3.bf16.msra.mxu0 %v596_v16 }
  0x79   :  { %559 = vmatprep.subr.bf16.mxu0 %v736_v0 }
  0x7c   :  { %560 = vmatpush3.bf16.msra.mxu0 %v598_v17 }
  0x7d   :  { %561 = vmatprep.subr.bf16.mxu0 %v736_v0 }
  0x80   :  { %562 = vmatpush3.bf16.msra.mxu0 %v600_v19 }
  0x81   :  { %563 = vmatprep.subr.bf16.mxu0 %v736_v0 }
  0x84   :  { %564 = vmatpush3.bf16.msra.mxu0 %v602_v21 }
  0x85   :  { %565 = vmatprep.subr.bf16.mxu0 %v736_v0 }
  0x88   :  { %566 = vmatpush3.bf16.msra.mxu0 %v604_v23 }
  0x8b   :  { %568 = vmatmul.mubr.bf16.vlgmr.msra.gmra.mrb[4].mxu0 %v606_v25 }
 0x13e   :  { %v186_v27 = vpop.f32.mrb[0].mxu0 }
 0x13f   :  { %v465_v28 = vadd.f32 -1.0, %v186_v27  ;;  %v529_v29 = vpop.f32.mrb[1].mxu0 }
 0x140   :  { %v189_v30 = vpop.f32.mrb[2].mxu0 }
 0x141   :  { %v195_v31 = vmul.f32 5.5, %v465_v28  ;;  %v466_v32 = vadd.f32 -1.0, %v189_v30  ;;  %v530_v33 = vpop.f32.mrb[3].mxu0 }
 0x143   :  { %v197_v34 = vmul.f32 1.442695, %v195_v31  ;;  %v196_v35 = vmul.f32 5.5, %v466_v32 }
 0x145   :  { %v199_v36 = vmul.f32 1.442695, %v196_v35  ;;  %608 = vpow2.f32 %v197_v34 }
 0x147   :  { %610 = vpow2.f32 %v199_v36 }
 0x14f   :  { %v609_v37 = vpop.eup %608 }
 0x151   :  { %v611_v38 = vpop.eup %610 }
 0x152   :  { %v201_v39 = vpack.c.bf16 %v611_v38, %v609_v37 }
 0x154   :  { %548 = vmatmul.mubr.bf16.vlgmr.msra.gmra.mrb[0].mxu1 %v201_v39 }
 0x15e   :  { %v422_v40 = vpop.f32.mrb[4].mxu0 }
 0x15f   :  { %v569_v41 = vpop.f32.mrb[5].mxu0  ;;  %v429_v44 = vmul.f32 60.0, %v422_v40 }
 0x160   :  { %v425_v42 = vpop.f32.mrb[6].mxu0 }
 0x161   :  { %v570_v43 = vpop.f32.mrb[7].mxu0  ;;  %v430_v46 = vmul.f32 60.0, %v425_v42 }
 0x227   :  { %v302_v45 = vpop.f32.mrb[0].mxu1 }
 0x228   :  { %v433_v47 = vadd.f32 %v429_v44, %v302_v45  ;;  %v549_v48 = vpop.f32.mrb[1].mxu1 }
 0x229   :  { %v305_v49 = vpop.f32.mrb[2].mxu1 }
 0x22a   :  { %435 = vst [vmem:[#allocation11] sm:$0xff] %v433_v47  ;;  %v434_v50 = vadd.f32 %v430_v46, %v305_v49  ;;  %v550_v51 = vpop.f32.mrb[3].mxu1 }
 0x22c   :  { %436 = vst [vmem:[#allocation11 + $0x8] sm:$0xff] %v434_v50 }
 0x22d   :  { %711 = shalt.err (!%p708_p8)
}
 0x22e   :  { %s712_s13 = scalar_lea.hbm %s886_s4, 256 }
 0x22f   :  { %p713_p9 = scmp.ne.s32.totalorder %s886_s4, %s712_s13  ;;  %p716_p10 = scmp.lt.u32.totalorder %s712_s13, %s886_s4 }
 0x231   :  { %p718_p11 = pnand %p716_p10, %p713_p9 }
 0x233   :  { %721 = shalt.err (!%p718_p11)
}
 0x234   :  { %s739_s19 = smov 128   ;;  %s740_s20 = smov 8  }
 0x235   :  { %448 = dma.vmem_to_hbm [thread:$0]  %s443_s27, 256, %s886_s4, [#allocation5], %s739_s19, %s739_s19, %s740_s20  }
 0x236   :  { %728 = dma.done.wait [#allocation5], 256  }
 0x237   :  { %729 = vsyncadd [#allocation5], 4294967040 }
 0x238   :  { %452 = vsyncpa [#allocation4], 1 }
 0x239   :  { %453 = vsyncpa [#allocation7], 1 }
 0x23a   :  { %454 = vsyncpa [#allocation10], 1 }
 0x23b   :  { %455 = vsyncpa [#allocation5], 1 }

</bundles_post_ra>
